<compile_context>
chip_gen: v5e
topology: v5e:2x2
jax: 0.10.0
libtpu: 0.0.40
codegen_flags: <defaults>
</compile_context>

<pallas_src>
import jax
import jax.numpy as jnp
from jax.experimental import pallas as pl
from jax.experimental.pallas import tpu as pltpu


IN_DIM = 13
HID = 32
OUT_DIM = 1


def _mlp_kernel(x_ref, w1_ref, b1_ref, w2_ref, b2_ref, w3_ref, b3_ref,
                w4_ref, b4_ref, o_ref):
    # x_ref: [IN_DIM, TB]   (batch on lanes)
    # wK:    [out, in]      bK: [out, 1]  (broadcasts over the lane/batch axis)
    x = x_ref[...]

    h1 = jnp.tanh(
        jnp.dot(w1_ref[...], x, preferred_element_type=jnp.float32)
        + b1_ref[...]
    )
    h2 = jnp.tanh(
        jnp.dot(w2_ref[...], h1, preferred_element_type=jnp.float32)
        + b2_ref[...]
    )
    h3 = jnp.tanh(
        jnp.dot(w3_ref[...], h2, preferred_element_type=jnp.float32)
        + b3_ref[...]
    )
    out = (
        jnp.dot(w4_ref[...], h3, preferred_element_type=jnp.float32)
        + b4_ref[...]
    )
    o_ref[...] = out.astype(o_ref.dtype)  # [1, TB], lane-dense store


def _round_up(n, m):
    return ((n + m - 1) // m) * m


def sensitivity_predictor_forward(x, params, *, tb=512):
    """x: [B, 13] float32. params: dict of [out,in] weights / [out,1] biases.
    Returns [B, 1] float32."""
    B = x.shape[0]

    # Tile the batch (lane) axis; don't make the tile bigger than needed for
    # small batches.  tb is a multiple of 128 -> lane-aligned tiles.
    tb = min(tb, _round_up(B, 128))
    B_pad = _round_up(B, tb)
    num_tiles = B_pad // tb

    # Batch-on-lanes layout: [13, B_pad], zero-padded tail columns.
    xt = x.T
    if B_pad != B:
        xt = jnp.pad(xt, ((0, 0), (0, B_pad - B)))

    w1, b1 = params["w1"], params["b1"]
    w2, b2 = params["w2"], params["b2"]
    w3, b3 = params["w3"], params["b3"]
    w4, b4 = params["w4"], params["b4"]

    # Weights/biases: full-array blocks, constant index_map -> resident in VMEM.
    def resident(shape):
        return pl.BlockSpec(shape, lambda i: tuple(0 for _ in shape))

    out = pl.pallas_call(
        _mlp_kernel,
        out_shape=jax.ShapeDtypeStruct((OUT_DIM, B_pad), jnp.float32),
        grid=(num_tiles,),
        in_specs=[
            pl.BlockSpec((IN_DIM, tb), lambda i: (0, i)),   # x tile (streamed)
            resident(w1.shape), resident(b1.shape),
            resident(w2.shape), resident(b2.shape),
            resident(w3.shape), resident(b3.shape),
            resident(w4.shape), resident(b4.shape),
        ],
        out_specs=pl.BlockSpec((OUT_DIM, tb), lambda i: (0, i)),
        compiler_params=pltpu.CompilerParams(
            dimension_semantics=("parallel",),
        ),
    )(xt, w1, b1, w2, b2, w3, b3, w4, b4)

    # [1, B_pad] -> [B, 1]
    return out[:, :B].T


def init_params(key):
    """Deterministic init mimicking PyTorch nn.Linear default:
    U(-1/sqrt(fan_in), 1/sqrt(fan_in)).  Weights stored [out, in] (PyTorch
    layout), biases [out, 1]."""
    def linear(key, fan_in, fan_out):
        kw, kb = jax.random.split(key)
        bound = 1.0 / jnp.sqrt(float(fan_in))
        w = jax.random.uniform(kw, (fan_out, fan_in), jnp.float32,
                               minval=-bound, maxval=bound)
        b = jax.random.uniform(kb, (fan_out, 1), jnp.float32,
                               minval=-bound, maxval=bound)
        return w, b

    k1, k2, k3, k4 = jax.random.split(key, 4)
    w1, b1 = linear(k1, IN_DIM, HID)
    w2, b2 = linear(k2, HID, HID)
    w3, b3 = linear(k3, HID, HID)
    w4, b4 = linear(k4, HID, OUT_DIM)
    return dict(w1=w1, b1=b1, w2=w2, b2=b2, w3=w3, b3=b3, w4=w4, b4=b4)


def reference_forward(x, params):
    h = jnp.tanh(x @ params["w1"].T + params["b1"].T)
    h = jnp.tanh(h @ params["w2"].T + params["b2"].T)
    h = jnp.tanh(h @ params["w3"].T + params["b3"].T)
    return h @ params["w4"].T + params["b4"].T


if __name__ == "__main__":
    key = jax.random.PRNGKey(0)
    kp, kx1, kx2 = jax.random.split(key, 3)

    params = init_params(kp)

    # Small batch (single tile, padded 8 -> 128 on the lane axis).
    B = 8
    x = jax.random.normal(kx1, (B, IN_DIM), dtype=jnp.float32)
    y = jax.block_until_ready(sensitivity_predictor_forward(x, params))
    y_ref = reference_forward(x, params)
    assert y.shape == (B, OUT_DIM), y.shape
    assert jnp.allclose(y, y_ref, atol=1e-5, rtol=1e-5), (
        float(jnp.max(jnp.abs(y - y_ref)))
    )

    # Multi-tile + ragged-tail path (B=200, tb=128 -> grid=(2,), pad to 256).
    B2 = 200
    x2 = jax.random.normal(kx2, (B2, IN_DIM), dtype=jnp.float32)
    y2 = jax.block_until_ready(sensitivity_predictor_forward(x2, params, tb=128))
    y2_ref = reference_forward(x2, params)
    assert y2.shape == (B2, OUT_DIM), y2.shape
    assert jnp.allclose(y2, y2_ref, atol=1e-5, rtol=1e-5), (
        float(jnp.max(jnp.abs(y2 - y2_ref)))
    )

    print("KERNEL_OK")
</pallas_src>

<mosaic_0001>
module attributes {stable_mosaic.version = 11 : i64} {
  func.func @_mlp_kernel(%arg0: i32, %arg1: memref<13x128xf32, #tpu.memory_space<vmem>>, %arg2: memref<32x13xf32, #tpu.memory_space<vmem>>, %arg3: memref<32x1xf32, #tpu.memory_space<vmem>>, %arg4: memref<32x32xf32, #tpu.memory_space<vmem>>, %arg5: memref<32x1xf32, #tpu.memory_space<vmem>>, %arg6: memref<32x32xf32, #tpu.memory_space<vmem>>, %arg7: memref<32x1xf32, #tpu.memory_space<vmem>>, %arg8: memref<1x32xf32, #tpu.memory_space<vmem>>, %arg9: memref<1x1xf32, #tpu.memory_space<vmem>>, %arg10: memref<1x128xf32, #tpu.memory_space<vmem>>) attributes {dimension_semantics = [#tpu.dimension_semantics<parallel>], iteration_bounds = array<i64: 1>, scalar_prefetch = 0 : i64, scratch_operands = 0 : i64, tpu.core_type = #tpu.core_type<tc>, window_params = [{transform_indices = @transform_0, window_bounds = array<i64: 13, 128>}, {pipeline_mode = #tpu.pipeline_mode<synchronous>, transform_indices = @transform_1, window_bounds = array<i64: 32, 13>}, {pipeline_mode = #tpu.pipeline_mode<synchronous>, transform_indices = @transform_2, window_bounds = array<i64: 32, 1>}, {pipeline_mode = #tpu.pipeline_mode<synchronous>, transform_indices = @transform_3, window_bounds = array<i64: 32, 32>}, {pipeline_mode = #tpu.pipeline_mode<synchronous>, transform_indices = @transform_4, window_bounds = array<i64: 32, 1>}, {pipeline_mode = #tpu.pipeline_mode<synchronous>, transform_indices = @transform_5, window_bounds = array<i64: 32, 32>}, {pipeline_mode = #tpu.pipeline_mode<synchronous>, transform_indices = @transform_6, window_bounds = array<i64: 32, 1>}, {pipeline_mode = #tpu.pipeline_mode<synchronous>, transform_indices = @transform_7, window_bounds = array<i64: 1, 32>}, {pipeline_mode = #tpu.pipeline_mode<synchronous>, transform_indices = @transform_8, window_bounds = array<i64: 1, 1>}, {transform_indices = @transform_9, window_bounds = array<i64: 1, 128>}]} {
    %c0 = arith.constant 0 : index
    %c0_0 = arith.constant 0 : index
    %0 = vector.load %arg1[%c0, %c0_0] : memref<13x128xf32, #tpu.memory_space<vmem>>, vector<13x128xf32>
    %c0_1 = arith.constant 0 : index
    %c0_2 = arith.constant 0 : index
    %1 = vector.load %arg2[%c0_1, %c0_2] : memref<32x13xf32, #tpu.memory_space<vmem>>, vector<32x13xf32>
    %cst = arith.constant dense<0.000000e+00> : vector<32x128xf32>
    %2 = tpu.matmul %1, %0, %cst {dimension_numbers = #tpu.dot_dimension_numbers<[1], [0], [0], [1], [0, 0, 1, 1], [], []>} : vector<32x13xf32>, vector<13x128xf32>, vector<32x128xf32> -> vector<32x128xf32>
    %c0_3 = arith.constant 0 : index
    %c0_4 = arith.constant 0 : index
    %3 = vector.load %arg3[%c0_3, %c0_4] : memref<32x1xf32, #tpu.memory_space<vmem>>, vector<32x1xf32>
    %4 = vector.broadcast %3 : vector<32x1xf32> to vector<32x128xf32>
    %5 = arith.addf %2, %4 : vector<32x128xf32>
    %6 = math.tanh %5 : vector<32x128xf32>
    %c0_5 = arith.constant 0 : index
    %c0_6 = arith.constant 0 : index
    %7 = vector.load %arg4[%c0_5, %c0_6] : memref<32x32xf32, #tpu.memory_space<vmem>>, vector<32x32xf32>
    %cst_7 = arith.constant dense<0.000000e+00> : vector<32x128xf32>
    %8 = tpu.matmul %7, %6, %cst_7 {dimension_numbers = #tpu.dot_dimension_numbers<[1], [0], [0], [1], [0, 0, 1, 1], [], []>} : vector<32x32xf32>, vector<32x128xf32>, vector<32x128xf32> -> vector<32x128xf32>
    %c0_8 = arith.constant 0 : index
    %c0_9 = arith.constant 0 : index
    %9 = vector.load %arg5[%c0_8, %c0_9] : memref<32x1xf32, #tpu.memory_space<vmem>>, vector<32x1xf32>
    %10 = vector.broadcast %9 : vector<32x1xf32> to vector<32x128xf32>
    %11 = arith.addf %8, %10 : vector<32x128xf32>
    %12 = math.tanh %11 : vector<32x128xf32>
    %c0_10 = arith.constant 0 : index
    %c0_11 = arith.constant 0 : index
    %13 = vector.load %arg6[%c0_10, %c0_11] : memref<32x32xf32, #tpu.memory_space<vmem>>, vector<32x32xf32>
    %cst_12 = arith.constant dense<0.000000e+00> : vector<32x128xf32>
    %14 = tpu.matmul %13, %12, %cst_12 {dimension_numbers = #tpu.dot_dimension_numbers<[1], [0], [0], [1], [0, 0, 1, 1], [], []>} : vector<32x32xf32>, vector<32x128xf32>, vector<32x128xf32> -> vector<32x128xf32>
    %c0_13 = arith.constant 0 : index
    %c0_14 = arith.constant 0 : index
    %15 = vector.load %arg7[%c0_13, %c0_14] : memref<32x1xf32, #tpu.memory_space<vmem>>, vector<32x1xf32>
    %16 = vector.broadcast %15 : vector<32x1xf32> to vector<32x128xf32>
    %17 = arith.addf %14, %16 : vector<32x128xf32>
    %18 = math.tanh %17 : vector<32x128xf32>
    %c0_15 = arith.constant 0 : index
    %c0_16 = arith.constant 0 : index
    %19 = vector.load %arg8[%c0_15, %c0_16] : memref<1x32xf32, #tpu.memory_space<vmem>>, vector<1x32xf32>
    %cst_17 = arith.constant dense<0.000000e+00> : vector<1x128xf32>
    %20 = tpu.matmul %19, %18, %cst_17 {dimension_numbers = #tpu.dot_dimension_numbers<[1], [0], [0], [1], [0, 0, 1, 1], [], []>} : vector<1x32xf32>, vector<32x128xf32>, vector<1x128xf32> -> vector<1x128xf32>
    %c0_18 = arith.constant 0 : index
    %c0_19 = arith.constant 0 : index
    %21 = vector.load %arg9[%c0_18, %c0_19] : memref<1x1xf32, #tpu.memory_space<vmem>>, vector<1x1xf32>
    %22 = vector.broadcast %21 : vector<1x1xf32> to vector<1x128xf32>
    %23 = arith.addf %20, %22 : vector<1x128xf32>
    %c0_20 = arith.constant 0 : index
    %c0_21 = arith.constant 0 : index
    %24 = vector.load %arg10[%c0_20, %c0_21] : memref<1x128xf32, #tpu.memory_space<vmem>>, vector<1x128xf32>
    tpu.vector_store %arg10[%c0_20, %c0_21], %23 {strides = array<i32>} : memref<1x128xf32, #tpu.memory_space<vmem>>, vector<1x128xf32>,
    return
  }
  func.func @transform_0(%arg0: i32) -> (i32, i32) {
    %c0_i32 = arith.constant 0 : i32
    %c0_i32_0 = arith.constant 0 : i32
    return %c0_i32, %arg0 : i32, i32
  }
  func.func @transform_1(%arg0: i32) -> (i32, i32) {
    %c0_i32 = arith.constant 0 : i32
    %c0_i32_0 = arith.constant 0 : i32
    %c0_i32_1 = arith.constant 0 : i32
    return %c0_i32, %c0_i32_0 : i32, i32
  }
  func.func @transform_2(%arg0: i32) -> (i32, i32) {
    %c0_i32 = arith.constant 0 : i32
    %c0_i32_0 = arith.constant 0 : i32
    %c0_i32_1 = arith.constant 0 : i32
    return %c0_i32, %c0_i32_0 : i32, i32
  }
  func.func @transform_3(%arg0: i32) -> (i32, i32) {
    %c0_i32 = arith.constant 0 : i32
    %c0_i32_0 = arith.constant 0 : i32
    %c0_i32_1 = arith.constant 0 : i32
    return %c0_i32, %c0_i32_0 : i32, i32
  }
  func.func @transform_4(%arg0: i32) -> (i32, i32) {
    %c0_i32 = arith.constant 0 : i32
    %c0_i32_0 = arith.constant 0 : i32
    %c0_i32_1 = arith.constant 0 : i32
    return %c0_i32, %c0_i32_0 : i32, i32
  }
  func.func @transform_5(%arg0: i32) -> (i32, i32) {
    %c0_i32 = arith.constant 0 : i32
    %c0_i32_0 = arith.constant 0 : i32
    %c0_i32_1 = arith.constant 0 : i32
    return %c0_i32, %c0_i32_0 : i32, i32
  }
  func.func @transform_6(%arg0: i32) -> (i32, i32) {
    %c0_i32 = arith.constant 0 : i32
    %c0_i32_0 = arith.constant 0 : i32
    %c0_i32_1 = arith.constant 0 : i32
    return %c0_i32, %c0_i32_0 : i32, i32
  }
  func.func @transform_7(%arg0: i32) -> (i32, i32) {
    %c0_i32 = arith.constant 0 : i32
    %c0_i32_0 = arith.constant 0 : i32
    %c0_i32_1 = arith.constant 0 : i32
    return %c0_i32, %c0_i32_0 : i32, i32
  }
  func.func @transform_8(%arg0: i32) -> (i32, i32) {
    %c0_i32 = arith.constant 0 : i32
    %c0_i32_0 = arith.constant 0 : i32
    %c0_i32_1 = arith.constant 0 : i32
    return %c0_i32, %c0_i32_0 : i32, i32
  }
  func.func @transform_9(%arg0: i32) -> (i32, i32) {
    %c0_i32 = arith.constant 0 : i32
    %c0_i32_0 = arith.constant 0 : i32
    return %c0_i32, %arg0 : i32, i32
  }
}

</mosaic_0001>

<bundles_post_ra>
// kernel: tpu_custom_call.1
= control target key start
LH: loop header
LB: loop body
LE: loop exit
PB: predicated region body
PF: predicated region fallthrough
CT: control target
= control target key end

     0   :  { %s531_s0 = inlined_call_operand.vmem [shape: f32[13,128], index: 0, kind: input, shape index: {}]   ;;  %s532_s1 = inlined_call_operand.vmem [shape: f32[32,13], index: 1, kind: input, shape index: {}]   ;;  %s533_s2 = inlined_call_operand.vmem [shape: f32[32,1], index: 2, kind: input, shape index: {}]   ;;  %s534_s3 = inlined_call_operand.vmem [shape: f32[32,32], index: 3, kind: input, shape index: {}]   ;;  %s535_s4 = inlined_call_operand.vmem [shape: f32[32,1], index: 4, kind: input, shape index: {}]   ;;  %s536_s5 = inlined_call_operand.vmem [shape: f32[32,32], index: 5, kind: input, shape index: {}]   ;;  %s537_s6 = inlined_call_operand.vmem [shape: f32[32,1], index: 6, kind: input, shape index: {}]   ;;  %s538_s7 = inlined_call_operand.vmem [shape: f32[1,32], index: 7, kind: input, shape index: {}]   ;;  %s539_s8 = inlined_call_operand.<no memory space> [shape: f32[1,1], index: 8, kind: input, shape index: {}]   ;;  %s540_s9 = inlined_call_operand.hbm [shape: f32[1,128], index: 9, kind: output, shape index: {}]  }
   0x1   :  { %v14_v0 = vstv %s539_s8 }
   0x2   :  { %15 = vst [vmem:[#allocation2] sm:$0x1] %v14_v0 }
   0x3   :  { %v36_v1 = vld [vmem:[%s531_s0 + $0x8] sm:$0x1f]  ;;  %vm78_vm0 = vcmask 1044480   ;;  %v44_v2 = vld [vmem:[%s533_s2 + $0x18] sm:$0xff]  ;;  %v35_v3 = vld [vmem:[%s531_s0] sm:$0xff]  ;;  %v379_v4 = vmov 0  }
   0x4   :  { %326 = vset.pattern.permute.xlu0 %v379_v4  ;;  %310 = vmatpush.msk.msra.mxu0 %vm78_vm0, %v36_v1  ;;  %v37_v5 = vld [vmem:[%s532_s1] sm:$0xff]  ;;  %vm65_vm1 = vcmask 105472   ;;  %v42_v6 = vld [vmem:[%s533_s2 + $0x8] sm:$0xff] }
   0x5   :  { %62 = vperm.xlu0 %326, %v44_v2   ;;  %327 = vset.pattern.permute.xlu1 %v379_v4 }
   0x6   :  { %97 = vmatpush.msra.mxu0 %v35_v3  ;;  %52 = vperm.xlu1 %327, %v42_v6  }
   0x7   :  { %311 = vmatmul.msk.f32.vlgmr.msra.gmra.mxu0 %vm65_vm1, %v37_v5  ;;  %328 = vset.pattern.permute.xlu2 %v379_v4 }
   0x8   :  { %16 = vsyncpa [#allocation4], 0  ;;  %v43_v7 = vld [vmem:[%s533_s2 + $0x10] sm:$0xff]  ;;  %v41_v8 = vld [vmem:[%s533_s2] sm:$0xff]  ;;  %vm143_vm2 = vcmask 261120   ;;  %s380_s12 = smov [#allocation3]  }
   0x9   :  { %v38_v9 = vld [vmem:[%s532_s1 + $0x8] sm:$0xff]  ;;  %v119_v11 = vld [vmem:[%s535_s4] sm:$0xff]  ;;  %v39_v12 = vld [vmem:[%s532_s1 + $0x10] sm:$0xff]  ;;  %s299_s13 = sshll.u32 %s380_s12, 4  ;;  %s301_s15 = sshll.u32 %s540_s9, 4  ;;  %s300_s13 = int_to_ptr.vmem [resolvable:$true] %s299_s13  ;;  %s302_s15 = int_to_ptr.hbm [resolvable:$true] %s301_s15 }
   0xa   :  { %v120_v10 = vld [vmem:[%s535_s4 + $0x8] sm:$0xff]  ;;  %v195_v13 = vld [vmem:[%s537_s6 + $0x10] sm:$0xff]  ;;  %v40_v15 = vld [vmem:[%s532_s1 + $0x18] sm:$0xff] }
   0xb   :  { %v194_v14 = vld [vmem:[%s537_s6 + $0x8] sm:$0xff]  ;;  %v263_v16 = vld [vmem:[#allocation2] sm:$0x1]  ;;  %v122_v30 = vld [vmem:[%s535_s4 + $0x18] sm:$0xff] }
   0xc   :  { %140 = vperm.xlu2 %328, %v122_v30   ;;  %v115_v33 = vld [vmem:[%s534_s3] sm:$0xff]  ;;  %v121_v35 = vld [vmem:[%s535_s4 + $0x10] sm:$0xff]  ;;  %v116_v36 = vld [vmem:[%s534_s3 + $0x8] sm:$0xff] }
   0xd   :  { %57 = vperm.xlu0 %326, %v43_v7   ;;  %v196_v37 = vld [vmem:[%s537_s6 + $0x18] sm:$0xff]  ;;  %v117_v38 = vld [vmem:[%s534_s3 + $0x10] sm:$0xff]  ;;  %v193_v39 = vld [vmem:[%s537_s6] sm:$0xff] }
   0xe   :  { %47 = vperm.xlu1 %327, %v41_v8   ;;  %v118_v40 = vld [vmem:[%s534_s3 + $0x18] sm:$0xff]  ;;  %v189_v56 = vld [vmem:[%s536_s5] sm:$0xff]  ;;  %v190_v58 = vld [vmem:[%s536_s5 + $0x8] sm:$0xff] }
   0xf   :  { %312 = vmatmul.msk.f32.gmra.mxu0 %vm65_vm1, %v38_v9  ;;  %v191_v59 = vld [vmem:[%s536_s5 + $0x10] sm:$0xff]  ;;  %v192_v60 = vld [vmem:[%s536_s5 + $0x18] sm:$0xff] }
  0x14   :  { %135 = vperm.xlu2 %328, %v121_v35  }
  0x15   :  { %130 = vperm.xlu0 %326, %v120_v10  }
  0x16   :  { %125 = vperm.xlu1 %327, %v119_v11  }
  0x17   :  { %313 = vmatmul.msk.f32.gmra.mxu0 %vm65_vm1, %v39_v12  ;;  %v262_v12 = vld [vmem:[%s538_s7] sm:$0x1] }
  0x1c   :  { %214 = vperm.xlu2 %328, %v196_v37  }
  0x1d   :  { %209 = vperm.xlu0 %326, %v195_v13  }
  0x1e   :  { %204 = vperm.xlu1 %327, %v194_v14  }
  0x1f   :  { %314 = vmatmul.msk.f32.gmra.mxu0 %vm65_vm1, %v40_v15 }
  0x24   :  { %199 = vperm.xlu2 %328, %v193_v39  }
  0x25   :  { %266 = vperm.xlu0 %326, %v263_v16  }
  0x66   :  { %v141_v43 = vpop.permute.xlu2 %140 }
  0x6e   :  { %v136_v45 = vpop.permute.xlu2 %135 }
  0x76   :  { %v215_v0 = vpop.permute.xlu2 %214 }
  0x77   :  { %v63_v19 = vpop.permute.xlu0 %62 }
  0x78   :  { %v53_v20 = vpop.permute.xlu1 %52 }
  0x7e   :  { %v200_v7 = vpop.permute.xlu2 %199 }
  0x7f   :  { %v58_v22 = vpop.permute.xlu0 %57 }
  0x80   :  { %v48_v26 = vpop.permute.xlu1 %47 }
  0x84   :  { %v99_v17 = vpop.f32.mrf.mxu0 }
  0x85   :  { %v100_v28 = vadd.f32 %v99_v17, %v48_v26 }
  0x87   :  { %v131_v49 = vpop.permute.xlu0 %130 }
  0x88   :  { %v126_v51 = vpop.permute.xlu1 %125 }
  0x8c   :  { %v102_v18 = vpop.f32.mrf.mxu0 }
  0x8d   :  { %v103_v27 = vadd.f32 %v102_v18, %v53_v20 }
  0x8f   :  { %v210_v1 = vpop.permute.xlu0 %209 }
  0x90   :  { %v205_v5 = vpop.permute.xlu1 %204 }
  0x94   :  { %v105_v21 = vpop.f32.mrf.mxu0 }
  0x95   :  { %v106_v24 = vadd.f32 %v105_v21, %v58_v22 }
  0x97   :  { %v267_v14 = vpop.permute.xlu0 %266 }
  0x98   :  { %v269_v15 = vperm.slane %v267_v14, 0 }
  0x9c   :  { %v108_v23 = vpop.f32.mrf.mxu0 }
  0x9d   :  { %v109_v25 = vadd.f32 %v108_v23, %v63_v19 }
  0x9f   :  { %329 = vtanh.f32 %v109_v25 }
  0xa0   :  { %331 = vtanh.f32 %v106_v24 }
  0xa1   :  { %333 = vtanh.f32 %v103_v27 }
  0xa2   :  { %335 = vtanh.f32 %v100_v28 }
  0xa5   :  { %v330_v29 = vpop.eup %329 }
  0xa6   :  { %168 = vmatpush.msra.mxu1 %v330_v29  ;;  %v332_v31 = vpop.eup %331 }
  0xa7   :  { %v334_v32 = vpop.eup %333 }
  0xa8   :  { %169 = vmatpush.msra.mxu1 %v332_v31  ;;  %v336_v34 = vpop.eup %335 }
  0xaa   :  { %170 = vmatpush.msra.mxu1 %v334_v32 }
  0xac   :  { %171 = vmatpush.msra.mxu1 %v336_v34 }
  0xad   :  { %315 = vmatmul.msk.f32.vlgmr.msra.gmra.mxu1 %vm143_vm2, %v115_v33 }
  0xb5   :  { %316 = vmatmul.msk.f32.gmra.mxu1 %vm143_vm2, %v116_v36 }
  0xbd   :  { %317 = vmatmul.msk.f32.gmra.mxu1 %vm143_vm2, %v117_v38 }
  0xc5   :  { %318 = vmatmul.msk.f32.gmra.mxu1 %vm143_vm2, %v118_v40 }
 0x12a   :  { %v173_v41 = vpop.f32.mrf.mxu1 }
 0x12b   :  { %v174_v52 = vadd.f32 %v173_v41, %v126_v51 }
 0x132   :  { %v176_v42 = vpop.f32.mrf.mxu1 }
 0x133   :  { %v177_v50 = vadd.f32 %v176_v42, %v131_v49 }
 0x13a   :  { %v179_v44 = vpop.f32.mrf.mxu1 }
 0x13b   :  { %v180_v47 = vadd.f32 %v179_v44, %v136_v45 }
 0x142   :  { %v182_v46 = vpop.f32.mrf.mxu1 }
 0x143   :  { %v183_v48 = vadd.f32 %v182_v46, %v141_v43 }
 0x145   :  { %337 = vtanh.f32 %v183_v48 }
 0x146   :  { %339 = vtanh.f32 %v180_v47 }
 0x147   :  { %341 = vtanh.f32 %v177_v50 }
 0x148   :  { %343 = vtanh.f32 %v174_v52 }
 0x14b   :  { %v338_v53 = vpop.eup %337 }
 0x14c   :  { %241 = vmatpush.msra.mxu2 %v338_v53  ;;  %v340_v54 = vpop.eup %339 }
 0x14d   :  { %v342_v55 = vpop.eup %341 }
 0x14e   :  { %242 = vmatpush.msra.mxu2 %v340_v54  ;;  %v344_v57 = vpop.eup %343 }
 0x150   :  { %243 = vmatpush.msra.mxu2 %v342_v55 }
 0x152   :  { %244 = vmatpush.msra.mxu2 %v344_v57 }
 0x153   :  { %319 = vmatmul.msk.f32.vlgmr.msra.gmra.mxu2 %vm143_vm2, %v189_v56 }
 0x15b   :  { %320 = vmatmul.msk.f32.gmra.mxu2 %vm143_vm2, %v190_v58 }
 0x163   :  { %321 = vmatmul.msk.f32.gmra.mxu2 %vm143_vm2, %v191_v59 }
 0x16b   :  { %322 = vmatmul.msk.f32.gmra.mxu2 %vm143_vm2, %v192_v60 }
 0x1d6   :  { %v246_v61 = vpop.f32.mrf.mxu2 }
 0x1d7   :  { %v247_v8 = vadd.f32 %v246_v61, %v200_v7 }
 0x1de   :  { %v249_v62 = vpop.f32.mrf.mxu2 }
 0x1df   :  { %v250_v6 = vadd.f32 %v249_v62, %v205_v5 }
 0x1e6   :  { %v252_v63 = vpop.f32.mrf.mxu2 }
 0x1e7   :  { %v253_v3 = vadd.f32 %v252_v63, %v210_v1 }
 0x1ee   :  { %v255_v2 = vpop.f32.mrf.mxu2 }
 0x1ef   :  { %v256_v4 = vadd.f32 %v255_v2, %v215_v0 }
 0x1f1   :  { %345 = vtanh.f32 %v256_v4 }
 0x1f2   :  { %347 = vtanh.f32 %v253_v3 }
 0x1f3   :  { %349 = vtanh.f32 %v250_v6 }
 0x1f4   :  { %351 = vtanh.f32 %v247_v8 }
 0x1f7   :  { %v346_v9 = vpop.eup %345 }
 0x1f8   :  { %285 = vmatpush.msra.mxu3 %v346_v9  ;;  %v348_v10 = vpop.eup %347 }
 0x1f9   :  { %v350_v11 = vpop.eup %349 }
 0x1fa   :  { %286 = vmatpush.msra.mxu3 %v348_v10  ;;  %v352_v13 = vpop.eup %351 }
 0x1fc   :  { %287 = vmatpush.msra.mxu3 %v350_v11 }
 0x1fe   :  { %288 = vmatpush.msra.mxu3 %v352_v13 }
 0x1ff   :  { %323 = vmatmul.msk.f32.vlgmr.msra.gmra.mxu3 %vm143_vm2, %v262_v12 }
 0x282   :  { %v290_v16 = vpop.f32.mrf.mxu3 }
 0x283   :  { %v291_v17 = vadd.f32 %v290_v16, %v269_v15 }
 0x285   :  { %293 = vst [vmem:[#allocation3] sm:$0x1] %v291_v17 }
 0x286   :  { %304 = dma.vmem_to_hbm [thread:$0]  %s300_s13, 16, %s302_s15, [#allocation4]  }
 0x287   :  { %377 = dma.done.wait [#allocation4], 16  }
 0x288   :  { %378 = vsyncadd [#allocation4], 4294967280 }
 0x289   :  { %309 = vsyncpa [#allocation4], 1 }

</bundles_post_ra>
